<compile_context>
chip_gen: v7x
topology: tpu7x:2x2x1
jax: 0.10.0
libtpu: 0.0.40
codegen_flags: <defaults>
</compile_context>

<pallas_src>
import functools
import math

import jax
import jax.numpy as jnp
from jax.experimental import pallas as pl
from jax.experimental.pallas import tpu as pltpu

LANE = 128
GN_GROUPS = 32
GN_EPS = 1e-5
VMEM_LIMIT = 32 * 1024 * 1024


def _round_up(x, m):
    return (x + m - 1) // m * m


def _cpad(c):
    return _round_up(c, LANE)


def _silu(x):
    # x * sigmoid(x); the approx reciprocal runs on the EUP alongside the exp.
    return x * pl.reciprocal(1.0 + jnp.exp(-x), approx=True)


def _gn(x, gmat, gamma, beta, inv_count):
    """GroupNorm on (N, L, Cp) f32.  Stats stay f32; per-group broadcast of the
    sums is a single (2N,Cp)@(Cp,Cp) matmul.  Padding channels stay exactly zero."""
    n, _, c = x.shape
    s1 = jnp.sum(x, axis=1)                                   # (N, C)
    s2 = jnp.sum(x * x, axis=1)                               # (N, C)
    e = jnp.dot(jnp.concatenate([s1, s2], axis=0), gmat,
                preferred_element_type=jnp.float32) * inv_count
    mean = e[:n].reshape(n, 1, c)
    meansq = e[n:].reshape(n, 1, c)
    var = jnp.maximum(meansq - mean * mean, 0.0)
    return (x - mean) * jax.lax.rsqrt(var + GN_EPS) * gamma + beta


def _conv_taps(pad_ref, w_ref, bias, H, W, cin):
    """3x3 stride-1 conv from an (N, H+2, W+2, >=cin) zero-padded VMEM scratch.
    The 9 taps are concatenated along K (lane-tile aligned, cin % 128 == 0) and
    contracted with ONE bf16 MXU matmul.  Returns (N*H*W, Cout) f32."""
    n = pad_ref.shape[0]
    taps = [pad_ref[:, di:di + H, dj:dj + W, :cin].astype(jnp.bfloat16)
            for di in range(3) for dj in range(3)]
    patch = jnp.concatenate(taps, axis=-1).reshape(n * H * W, 9 * cin)
    return jnp.dot(patch, w_ref[...], preferred_element_type=jnp.float32) + bias


# --------------------------------------------------------------------------------
# Kernel 1: fused time embedding (linear -> SiLU -> linear), one launch.
# --------------------------------------------------------------------------------
def _timeembed_kernel(t_ref, w1_ref, b1_ref, w2_ref, b2_ref, o_ref):
    t = t_ref[...].astype(jnp.bfloat16)
    h1 = jnp.dot(t, w1_ref[...], preferred_element_type=jnp.float32) + b1_ref[...]
    h1 = _silu(h1).astype(jnp.bfloat16)
    o_ref[...] = jnp.dot(h1, w2_ref[...], preferred_element_type=jnp.float32) + b2_ref[...]


# --------------------------------------------------------------------------------
# Kernel 2: standalone 3x3 stride-1 conv (stem conv and the Downsample conv body).
# Padding is done in-kernel via a zeroed VMEM scratch; bf16 in / bf16 out / f32 acc.
# --------------------------------------------------------------------------------
def _conv_kernel(x_ref, w_ref, b_ref, o_ref, pad_ref, *, H, W):
    n = x_ref.shape[0]
    c = x_ref.shape[-1]
    pad_ref[...] = jnp.zeros_like(pad_ref)
    pad_ref[:, 1:H + 1, 1:W + 1, :] = x_ref[...].astype(pad_ref.dtype)
    y = _conv_taps(pad_ref, w_ref, b_ref[...], H, W, c)
    o_ref[...] = y.reshape(n, H, W, w_ref.shape[-1]).astype(o_ref.dtype)


def pallas_conv3x3(h, w9, bias):
    """h: (N,H,W,Cp) bf16; w9: (9*Cp, CoutP) bf16; bias: (1, CoutP) f32."""
    N, H, W, C = h.shape
    CoutP = w9.shape[-1]
    kern = functools.partial(_conv_kernel, H=H, W=W)
    return pl.pallas_call(
        kern,
        out_shape=jax.ShapeDtypeStruct((N, H, W, CoutP), jnp.bfloat16),
        scratch_shapes=[pltpu.VMEM((N, H + 2, W + 2, C), jnp.float32)],
        compiler_params=pltpu.CompilerParams(vmem_limit_bytes=VMEM_LIMIT),
    )(h, w9, bias)


# --------------------------------------------------------------------------------
# Kernel 3: fully fused ResBlock.
# GN1+SiLU -> conv3x3 -> (+ SiLU(emb) @ W_emb) -> GN2+SiLU -> conv3x3 -> + skip(x)
# --------------------------------------------------------------------------------
def _resblock_kernel(x_ref, emb_ref, g1_ref, be1_ref, gm1_ref, w1_ref, b1_ref,
                     we_ref, bemb_ref, g2_ref, be2_ref, gm2_ref, w2_ref, b2_ref,
                     *rest, H, W, inv1, inv2, has_skip):
    if has_skip:
        ws_ref, bs_ref, o_ref, pad_ref = rest
    else:
        o_ref, pad_ref = rest
    n = x_ref.shape[0]
    cpi = x_ref.shape[-1]
    cpo = o_ref.shape[-1]
    L = H * W

    x = x_ref[...].astype(jnp.float32).reshape(n, L, cpi)

    # in_layers: GN -> SiLU -> conv3x3 (spatial pad via zeroed VMEM scratch)
    hn = _silu(_gn(x, gm1_ref[...], g1_ref[...], be1_ref[...], inv1))
    pad_ref[...] = jnp.zeros_like(pad_ref)
    pad_ref[:, 1:H + 1, 1:W + 1, :cpi] = hn.reshape(n, H, W, cpi)
    hc = _conv_taps(pad_ref, w1_ref, b1_ref[...], H, W, cpi).reshape(n, L, cpo)

    # emb_layers: SiLU -> linear, broadcast-add over spatial (fused, no extra launch)
    e = _silu(emb_ref[...]).astype(jnp.bfloat16)
    e = jnp.dot(e, we_ref[...], preferred_element_type=jnp.float32) + bemb_ref[...]
    hc = hc + e.reshape(n, 1, cpo)

    # out_layers: GN -> SiLU -> conv3x3 (dropout=0 -> identity)
    hn2 = _silu(_gn(hc, gm2_ref[...], g2_ref[...], be2_ref[...], inv2))
    pad_ref[:, 1:H + 1, 1:W + 1, :cpo] = hn2.reshape(n, H, W, cpo)
    y = _conv_taps(pad_ref, w2_ref, b2_ref[...], H, W, cpo).reshape(n, L, cpo)

    # skip connection / residual
    if has_skip:
        res = jnp.dot(x_ref[...].reshape(n * L, cpi), ws_ref[...],
                      preferred_element_type=jnp.float32) + bs_ref[...]
        res = res.reshape(n, L, cpo)
    else:
        res = x
    o_ref[...] = (y + res).reshape(n, H, W, cpo).astype(o_ref.dtype)


def pallas_resblock(h, emb, p):
    N, H, W, Cpi = h.shape
    Cpo = p["conv1_w"].shape[-1]
    has_skip = "skip_w" in p
    args = [h, emb,
            p["gn1_g"], p["gn1_b"], p["gn1_m"], p["conv1_w"], p["conv1_b"],
            p["emb_w"], p["emb_b"],
            p["gn2_g"], p["gn2_b"], p["gn2_m"], p["conv2_w"], p["conv2_b"]]
    if has_skip:
        args += [p["skip_w"], p["skip_b"]]
    kern = functools.partial(
        _resblock_kernel, H=H, W=W,
        inv1=1.0 / float((p["cin"] // GN_GROUPS) * H * W),
        inv2=1.0 / float((p["cout"] // GN_GROUPS) * H * W),
        has_skip=has_skip)
    Cs = max(Cpi, Cpo)
    return pl.pallas_call(
        kern,
        out_shape=jax.ShapeDtypeStruct((N, H, W, Cpo), jnp.bfloat16),
        scratch_shapes=[pltpu.VMEM((N, H + 2, W + 2, Cs), jnp.float32)],
        compiler_params=pltpu.CompilerParams(vmem_limit_bytes=VMEM_LIMIT),
    )(*args)


# --------------------------------------------------------------------------------
# Kernel 4: fused attention block (GN, qkv proj, per-head scaled softmax attention,
# output proj, residual) with lane-aligned per-head q/k/v slabs.
# --------------------------------------------------------------------------------
def _attn_kernel(x_ref, g_ref, b_ref, gm_ref, wqkv_ref, bqkv_ref, wp_ref, bp_ref,
                 o_ref, *, num_heads, ch, ch_pad, inv_count):
    n, t, cp = x_ref.shape
    x = x_ref[...].astype(jnp.float32)
    xn = _gn(x, gm_ref[...], g_ref[...], b_ref[...], inv_count)
    xn = xn.reshape(n * t, cp).astype(jnp.bfloat16)
    qkv = jnp.dot(xn, wqkv_ref[...], preferred_element_type=jnp.float32) + bqkv_ref[...]
    qkv = qkv.reshape(n, t, 3 * num_heads * ch_pad)
    scale = 1.0 / math.sqrt(math.sqrt(ch))
    heads = []
    for hd in range(num_heads):
        base = hd * 3 * ch_pad                                # lane-tile aligned slabs
        q = (qkv[:, :, base:base + ch_pad] * scale).astype(jnp.bfloat16)
        k = (qkv[:, :, base + ch_pad:base + 2 * ch_pad] * scale).astype(jnp.bfloat16)
        v = qkv[:, :, base + 2 * ch_pad:base + 3 * ch_pad].astype(jnp.bfloat16)
        w = jnp.einsum('btc,bsc->bts', q, k, preferred_element_type=jnp.float32)
        w = jnp.exp(w - jnp.max(w, axis=-1, keepdims=True))
        w = w * pl.reciprocal(jnp.sum(w, axis=-1, keepdims=True), approx=True)
        a = jnp.einsum('bts,bsc->btc', w.astype(jnp.bfloat16), v,
                       preferred_element_type=jnp.float32)
        heads.append(a)
    a = heads[0] if num_heads == 1 else jnp.concatenate(heads, axis=-1)
    a = a.reshape(n * t, num_heads * ch_pad).astype(jnp.bfloat16)
    proj = jnp.dot(a, wp_ref[...], preferred_element_type=jnp.float32) + bp_ref[...]
    o_ref[...] = (proj.reshape(n, t, cp) + x).astype(o_ref.dtype)


def pallas_attention(h, p, num_heads):
    # TODO(synk): T = H*W (=64 here) is below 128 lanes; packing T to a full 128-lane
    # tile for the (T,T) softmax matmuls was not implemented.
    N, H, W, Cp = h.shape
    T = H * W
    c = p["cout"]
    ch = c // num_heads
    kern = functools.partial(_attn_kernel, num_heads=num_heads, ch=ch,
                             ch_pad=_cpad(ch),
                             inv_count=1.0 / float((c // GN_GROUPS) * T))
    out = pl.pallas_call(
        kern,
        out_shape=jax.ShapeDtypeStruct((N, T, Cp), jnp.bfloat16),
        compiler_params=pltpu.CompilerParams(vmem_limit_bytes=VMEM_LIMIT),
    )(h.reshape(N, T, Cp), p["gn_g"], p["gn_b"], p["gn_m"],
      p["qkv_w"], p["qkv_b"], p["proj_w"], p["proj_b"])
    return out.reshape(N, H, W, Cp)


def timestep_embedding(timesteps, dim, max_period=10000):
    half = dim // 2
    freqs = jnp.exp(-math.log(max_period) * jnp.arange(half, dtype=jnp.float32) / half)
    args = timesteps.astype(jnp.float32)[:, None] * freqs[None, :]
    emb = jnp.concatenate([jnp.cos(args), jnp.sin(args)], axis=-1)
    if dim % 2:
        emb = jnp.concatenate([emb, jnp.zeros_like(emb[:, :1])], axis=-1)
    return emb


# --------------------------------------------------------------------------------
# EncoderUNetModel (JAX/Pallas re-implementation of the torch forward pass)
# --------------------------------------------------------------------------------
class EncoderUNetPallas:
    def __init__(self, key, image_size, in_channels, model_channels, num_res_blocks,
                 attention_resolutions, channel_mult=(1, 2), num_heads=1):
        self.model_channels = model_channels
        self.mc_pad = _cpad(model_channels)
        self.num_heads = num_heads
        self.in_channels = in_channels
        self.cin_pad = _cpad(in_channels)
        ted = model_channels * 4
        self.ted_pad = _cpad(ted)

        keys = iter(jax.random.split(key, 512))

        def nxt():
            return next(keys)

        def init_dense(ki, ko, ki_pad, ko_pad):
            w = jax.random.normal(nxt(), (ki, ko), jnp.float32) / math.sqrt(ki)
            w = jnp.pad(w, ((0, ki_pad - ki), (0, ko_pad - ko))).astype(jnp.bfloat16)
            b = jax.random.normal(nxt(), (ko,), jnp.float32) * 0.01
            b = jnp.pad(b, (0, ko_pad - ko)).reshape(1, ko_pad)
            return w, b

        def init_conv3(ci, co, ci_pad, co_pad):
            # weight layout: rows = tap-major (di,dj), channel-minor -> matches the
            # in-kernel 9-tap lane concatenation order.
            w = jax.random.normal(nxt(), (9, ci, co), jnp.float32) / math.sqrt(9 * ci)
            w = jnp.pad(w, ((0, 0), (0, ci_pad - ci), (0, co_pad - co)))
            w = w.reshape(9 * ci_pad, co_pad).astype(jnp.bfloat16)
            b = jax.random.normal(nxt(), (co,), jnp.float32) * 0.01
            b = jnp.pad(b, (0, co_pad - co)).reshape(1, co_pad)
            return w, b

        def init_gn(c):
            cp = _cpad(c)
            gamma = jnp.pad(jnp.ones((c,), jnp.float32), (0, cp - c)).reshape(1, 1, cp)
            beta = jnp.zeros((1, 1, cp), jnp.float32)
            gs = c // GN_GROUPS
            idx = jnp.arange(cp)
            gid = jnp.where(idx < c, idx // gs, -1)
            gmat = ((gid[:, None] == gid[None, :]) & (gid[:, None] >= 0)).astype(jnp.float32)
            return gamma, beta, gmat

        def init_res(ci, co):
            p = {"cin": ci, "cout": co}
            p["gn1_g"], p["gn1_b"], p["gn1_m"] = init_gn(ci)
            p["conv1_w"], p["conv1_b"] = init_conv3(ci, co, _cpad(ci), _cpad(co))
            p["emb_w"], p["emb_b"] = init_dense(ted, co, self.ted_pad, _cpad(co))
            p["gn2_g"], p["gn2_b"], p["gn2_m"] = init_gn(co)
            # NOTE: conv2 is zero_module in torch; random weights keep the test non-trivial.
            p["conv2_w"], p["conv2_b"] = init_conv3(co, co, _cpad(co), _cpad(co))
            if ci != co:
                p["skip_w"], p["skip_b"] = init_dense(ci, co, _cpad(ci), _cpad(co))
            return p

        def init_attn(c):
            cp = _cpad(c)
            ch = c // num_heads
            chp = _cpad(ch)
            p = {"cout": c}
            p["gn_g"], p["gn_b"], p["gn_m"] = init_gn(c)
            # Lane-aligned qkv: each head's q / k / v occupies its own 128-lane slab
            # (QKVAttentionLegacy channel order within each head).
            qkv_w = jnp.zeros((cp, 3 * num_heads * chp), jnp.float32)
            qkv_b = jnp.zeros((3 * num_heads * chp,), jnp.float32)
            for hd in range(num_heads):
                for t in range(3):
                    col = (hd * 3 + t) * chp
                    wblk = jax.random.normal(nxt(), (c, ch), jnp.float32) / math.sqrt(c)
                    bblk = jax.random.normal(nxt(), (ch,), jnp.float32) * 0.01
                    qkv_w = qkv_w.at[:c, col:col + ch].set(wblk)
                    qkv_b = qkv_b.at[col:col + ch].set(bblk)
            p["qkv_w"] = qkv_w.astype(jnp.bfloat16)
            p["qkv_b"] = qkv_b.reshape(1, -1)
            # NOTE: proj_out is zero_module in torch; random weights here.
            proj_w = jnp.zeros((num_heads * chp, cp), jnp.float32)
            for hd in range(num_heads):
                wblk = jax.random.normal(nxt(), (ch, c), jnp.float32) / math.sqrt(c)
                proj_w = proj_w.at[hd * chp:hd * chp + ch, :c].set(wblk)
            p["proj_w"] = proj_w.astype(jnp.bfloat16)
            p["proj_b"] = jnp.pad(jax.random.normal(nxt(), (c,), jnp.float32) * 0.01,
                                  (0, cp - c)).reshape(1, cp)
            return p

        # time_embed: linear -> SiLU -> linear (run as one fused kernel)
        self.te1_w, self.te1_b = init_dense(model_channels, ted, self.mc_pad, self.ted_pad)
        self.te2_w, self.te2_b = init_dense(ted, ted, self.ted_pad, self.ted_pad)

        # input_blocks (same construction loop as the torch __init__)
        ch = int(channel_mult[0] * model_channels)
        w0, b0 = init_conv3(in_channels, ch, self.cin_pad, _cpad(ch))
        self.blocks = [[("conv", {"w": w0, "b": b0, "cout": ch})]]
        ds = 1
        for level, mult in enumerate(channel_mult):
            for _ in range(num_res_blocks):
                out_ch = int(mult * model_channels)
                layers = [("res", init_res(ch, out_ch))]
                ch = out_ch
                if ds in attention_resolutions:
                    layers.append(("attn", init_attn(ch)))
                self.blocks.append(layers)
            if level != len(channel_mult) - 1:
                wd, bd = init_conv3(ch, ch, _cpad(ch), _cpad(ch))
                self.blocks.append([("down", {"w": wd, "b": bd, "cout": ch})])
                ds *= 2

    def forward(self, x, timesteps):
        N = x.shape[0]
        temb = timestep_embedding(timesteps, self.model_channels)
        temb = jnp.pad(temb, ((0, 0), (0, self.mc_pad - self.model_channels)))
        emb = pl.pallas_call(
            _timeembed_kernel,
            out_shape=jax.ShapeDtypeStruct((N, self.ted_pad), jnp.float32),
            compiler_params=pltpu.CompilerParams(vmem_limit_bytes=VMEM_LIMIT),
        )(temb, self.te1_w, self.te1_b, self.te2_w, self.te2_b)

        # TODO(synk): nn.Upsample(bilinear) path (upscale_factor is not None) is not
        # exercised by this config and is left unimplemented.
        h = jnp.transpose(x.astype(jnp.float32), (0, 2, 3, 1))            # NCHW -> NHWC
        h = jnp.pad(h, ((0, 0), (0, 0), (0, 0), (0, self.cin_pad - self.in_channels)))
        h = h.astype(jnp.bfloat16)

        hs = []
        for block in self.blocks:
            for kind, p in block:
                if kind == "conv":
                    h = pallas_conv3x3(h, p["w"], p["b"])
                elif kind == "res":
                    h = pallas_resblock(h, emb, p)
                elif kind == "attn":
                    h = pallas_attention(h, p, self.num_heads)
                elif kind == "down":
                    # stride-2 conv == stride-1 conv + 2x2 output subsample.
                    # TODO(synk): fold the stride-2 subsample into the conv kernel
                    # (needs a sublane-strided gather along W).
                    h = pallas_conv3x3(h, p["w"], p["b"])[:, ::2, ::2, :]
            cout = block[-1][1]["cout"]
            hs.append(jnp.transpose(h[..., :cout].astype(jnp.float32), (0, 3, 1, 2)))
        return hs


if __name__ == "__main__":
    key = jax.random.PRNGKey(0)
    kx, kt, kp = jax.random.split(key, 3)

    model = EncoderUNetPallas(
        kp,
        image_size=16,
        in_channels=4,
        model_channels=32,
        num_res_blocks=1,
        attention_resolutions=(2,),
        channel_mult=(1, 2),
        num_heads=1,
    )

    x = jax.random.normal(kx, (2, 4, 16, 16), jnp.float32)
    timesteps = jax.random.uniform(kt, (2,), jnp.float32, 0.0, 1000.0)

    hs = model.forward(x, timesteps)
    hs = jax.block_until_ready(hs)

    expected = [(2, 32, 16, 16), (2, 32, 16, 16), (2, 32, 8, 8), (2, 64, 8, 8)]
    assert [tuple(h.shape) for h in hs] == expected, [h.shape for h in hs]
    assert all(bool(jnp.all(jnp.isfinite(h))) for h in hs)
    print("KERNEL_OK")
</pallas_src>

<mosaic_0001>
module attributes {stable_mosaic.version = 11 : i64} {
  func.func @_timeembed_kernel(%arg0: memref<2x128xf32, #tpu.memory_space<vmem>>, %arg1: memref<128x128xbf16, #tpu.memory_space<vmem>>, %arg2: memref<1x128xf32, #tpu.memory_space<vmem>>, %arg3: memref<128x128xbf16, #tpu.memory_space<vmem>>, %arg4: memref<1x128xf32, #tpu.memory_space<vmem>>, %arg5: memref<2x128xf32, #tpu.memory_space<vmem>>) attributes {dimension_semantics = [], scalar_prefetch = 0 : i64, scratch_operands = 0 : i64, tpu.core_type = #tpu.core_type<tc>} {
    %c0 = arith.constant 0 : index
    %c0_0 = arith.constant 0 : index
    %0 = vector.load %arg0[%c0, %c0_0] : memref<2x128xf32, #tpu.memory_space<vmem>>, vector<2x128xf32>
    %1 = arith.truncf %0 : vector<2x128xf32> to vector<2x128xbf16>
    %c0_1 = arith.constant 0 : index
    %c0_2 = arith.constant 0 : index
    %2 = vector.load %arg1[%c0_1, %c0_2] : memref<128x128xbf16, #tpu.memory_space<vmem>>, vector<128x128xbf16>
    %cst = arith.constant dense<0.000000e+00> : vector<2x128xf32>
    %3 = tpu.matmul %1, %2, %cst {dimension_numbers = #tpu.dot_dimension_numbers<[1], [0], [0], [1], [0, 0, 1, 1], [], []>} : vector<2x128xbf16>, vector<128x128xbf16>, vector<2x128xf32> -> vector<2x128xf32>
    %c0_3 = arith.constant 0 : index
    %c0_4 = arith.constant 0 : index
    %4 = vector.load %arg2[%c0_3, %c0_4] : memref<1x128xf32, #tpu.memory_space<vmem>>, vector<1x128xf32>
    %5 = vector.broadcast %4 : vector<1x128xf32> to vector<2x128xf32>
    %6 = arith.addf %3, %5 : vector<2x128xf32>
    %cst_5 = arith.constant 0.000000e+00 : f32
    %7 = vector.broadcast %cst_5 : f32 to vector<2x128xf32>
    %8 = arith.subf %7, %6 : vector<2x128xf32>
    %9 = math.exp %8 : vector<2x128xf32>
    %cst_6 = arith.constant 1.000000e+00 : f32
    %10 = vector.broadcast %cst_6 : f32 to vector<2x128xf32>
    %11 = arith.addf %10, %9 : vector<2x128xf32>
    %12 = tpu.reciprocal %11 {approx = true} : vector<2x128xf32> -> vector<2x128xf32>
    %13 = arith.mulf %6, %12 : vector<2x128xf32>
    %14 = arith.truncf %13 : vector<2x128xf32> to vector<2x128xbf16>
    %c0_7 = arith.constant 0 : index
    %c0_8 = arith.constant 0 : index
    %15 = vector.load %arg3[%c0_7, %c0_8] : memref<128x128xbf16, #tpu.memory_space<vmem>>, vector<128x128xbf16>
    %cst_9 = arith.constant dense<0.000000e+00> : vector<2x128xf32>
    %16 = tpu.matmul %14, %15, %cst_9 {dimension_numbers = #tpu.dot_dimension_numbers<[1], [0], [0], [1], [0, 0, 1, 1], [], []>} : vector<2x128xbf16>, vector<128x128xbf16>, vector<2x128xf32> -> vector<2x128xf32>
    %c0_10 = arith.constant 0 : index
    %c0_11 = arith.constant 0 : index
    %17 = vector.load %arg4[%c0_10, %c0_11] : memref<1x128xf32, #tpu.memory_space<vmem>>, vector<1x128xf32>
    %18 = vector.broadcast %17 : vector<1x128xf32> to vector<2x128xf32>
    %19 = arith.addf %16, %18 : vector<2x128xf32>
    %c0_12 = arith.constant 0 : index
    %c0_13 = arith.constant 0 : index
    %20 = vector.load %arg5[%c0_12, %c0_13] : memref<2x128xf32, #tpu.memory_space<vmem>>, vector<2x128xf32>
    tpu.vector_store %arg5[%c0_12, %c0_13], %19 {strides = array<i32>} : memref<2x128xf32, #tpu.memory_space<vmem>>, vector<2x128xf32>,
    return
  }
}

</mosaic_0001>

<bundles_post_ra>
// kernel: tpu_custom_call.1
= control target key start
LH: loop header
LB: loop body
LE: loop exit
PB: predicated region body
PF: predicated region fallthrough
CT: control target
= control target key end

     0   :  { %10 = vsyncpa [#allocation3], 0  ;;  %s605_s0 = inlined_call_operand.hbm [shape: f32[2,128], index: 0, kind: input, shape index: {}]   ;;  %s606_s1 = inlined_call_operand.hbm [shape: bf16[128,128], index: 1, kind: input, shape index: {}]   ;;  %s607_s2 = inlined_call_operand.vmem [shape: f32[1,128], index: 2, kind: input, shape index: {}]   ;;  %s608_s3 = inlined_call_operand.hbm [shape: bf16[128,128], index: 3, kind: input, shape index: {}]   ;;  %s609_s4 = inlined_call_operand.vmem [shape: f32[1,128], index: 4, kind: input, shape index: {}]   ;;  %s610_s5 = inlined_call_operand.hbm [shape: f32[2,128], index: 5, kind: output, shape index: {}]  }
   0x1   :  { %11 = vsyncpa [#allocation6], 0 }
   0x2   :  { %12 = vsyncpa [#allocation4], 0  ;;  %s507_s18 = smov [#allocation5]   ;;  %s413_s22 = scalar_lea.hbm %s606_s1, 1024 }
   0x3   :  { %s28_s19 = sshll.u32 %s507_s18, 4  ;;  %p414_p0 = scmp.ne.s32.totalorder %s606_s1, %s413_s22  ;;  %s29_s19 = int_to_ptr.vmem [resolvable:$true] %s28_s19 }
   0x4   :  { %p417_p1 = scmp.lt.u32.totalorder %s413_s22, %s606_s1 }
   0x6   :  { %p419_p2 = pnand %p417_p1, %p414_p0 }
   0x8   :  { %422 = shalt.err (!%p419_p2)
}
   0x9   :  { %s423_s27 = scalar_lea.vmem %s29_s19, 1024  ;;  %p428_p4 = scmp.lt.s32.totalorder %s29_s19, %s29_s19 }
   0xa   :  { %p424_p3 = scmp.ne.s32.totalorder %s29_s19, %s423_s27  ;;  %p429_p5 = scmp.lt.s32.totalorder %s423_s27, %s423_s27 }
   0xc   :  { %p430_p6 = por %p429_p5, %p428_p4 }
   0xe   :  { %p431_p7 = pnand %p430_p6, %p424_p3 }
  0x10   :  { %434 = shalt.err (!%p431_p7)
}
  0x11   :  { %s508_s28 = smov 64   ;;  %s509_s29 = smov 4  }
  0x12   :  { %34 = dma.hbm_to_vmem [thread:$0]  %s606_s1, 1024, %s29_s19, [#allocation6], %s508_s28, %s508_s28, %s509_s29  }
  0x13   :  { %s510_s7 = smov [#allocation2]   ;;  %s511_s9 = smov [#allocation7]  }
  0x14   :  { %s19_s8 = sshll.u32 %s510_s7, 4  ;;  %s42_s10 = sshll.u32 %s511_s9, 4  ;;  %s20_s8 = int_to_ptr.vmem [resolvable:$true] %s19_s8  ;;  %s43_s10 = int_to_ptr.vmem [resolvable:$true] %s42_s10 }
  0x15   :  { %s435_s13 = scalar_lea.hbm %s605_s0, 32 }
  0x16   :  { %p436_p8 = scmp.ne.s32.totalorder %s605_s0, %s435_s13  ;;  %p439_p9 = scmp.lt.u32.totalorder %s435_s13, %s605_s0 }
  0x18   :  { %p441_p10 = pnand %p439_p9, %p436_p8 }
  0x1a   :  { %444 = shalt.err (!%p441_p10)
}
  0x1b   :  { %s445_s1 = scalar_lea.vmem %s20_s8, 32  ;;  %p450_p12 = scmp.lt.s32.totalorder %s20_s8, %s20_s8 }
  0x1c   :  { %p446_p11 = scmp.ne.s32.totalorder %s20_s8, %s445_s1  ;;  %p451_p13 = scmp.lt.s32.totalorder %s445_s1, %s445_s1 }
  0x1e   :  { %p452_p0 = por %p451_p13, %p450_p12 }
  0x20   :  { %p453_p1 = pnand %p452_p0, %p446_p11 }
  0x22   :  { %456 = shalt.err (!%p453_p1)
}
  0x23   :  { %22 = dma.hbm_to_vmem [thread:$0]  %s605_s0, 32, %s20_s8, [#allocation3]  }
  0x24   :  { %s457_s22 = scalar_lea.hbm %s608_s3, 1024 }
  0x25   :  { %p458_p2 = scmp.ne.s32.totalorder %s608_s3, %s457_s22  ;;  %p461_p3 = scmp.lt.u32.totalorder %s457_s22, %s608_s3 }
  0x27   :  { %p463_p4 = pnand %p461_p3, %p458_p2 }
  0x29   :  { %466 = shalt.err (!%p463_p4)
}
  0x2a   :  { %s467_s27 = scalar_lea.vmem %s43_s10, 1024  ;;  %p472_p6 = scmp.lt.s32.totalorder %s43_s10, %s43_s10 }
  0x2b   :  { %p468_p5 = scmp.ne.s32.totalorder %s43_s10, %s467_s27  ;;  %p473_p7 = scmp.lt.s32.totalorder %s467_s27, %s467_s27 }
  0x2d   :  { %p474_p8 = por %p473_p7, %p472_p6 }
  0x2f   :  { %p475_p9 = pnand %p474_p8, %p468_p5 }
  0x31   :  { %478 = shalt.err (!%p475_p9)
}
  0x32   :  { %48 = dma.hbm_to_vmem [thread:$0]  %s608_s3, 1024, %s43_s10, [#allocation6], %s508_s28, %s508_s28, %s509_s29  }
  0x33   :  { %501 = dma.done.wait [#allocation3], 32  }
  0x34   :  { %502 = vsyncadd [#allocation3], 4294967264 }
  0x35   :  { %503 = dma.done.wait [#allocation6], 2048  }
  0x36   :  { %504 = vsyncadd [#allocation6], 4294965248  ;;  %v512_v0 = vmov 0.0   ;;  %vm513_vm0 = vmmov 0   ;;  %v393_v1 = vld [vmem:[#allocation5] sm:$0xff]   ;;  %v394_v2 = vld [vmem:[#allocation5 + $0x8] sm:$0xff]  }
  0x37   :  { %345 = vmatprep.subr.bf16.mxu0 %v512_v0  ;;  %361 = vmatprep.mubr.msk.bf16.mxu0 %vm513_vm0, %v512_v0  ;;  %v395_v3 = vld [vmem:[#allocation5 + $0x10] sm:$0xff]   ;;  %v396_v4 = vld [vmem:[#allocation5 + $0x18] sm:$0xff]   ;;  %v397_v5 = vld [vmem:[#allocation5 + $0x20] sm:$0xff]  }
  0x38   :  { %365 = vmatprep.subr.bf16.mxu1 %v512_v0  ;;  %381 = vmatprep.mubr.msk.bf16.mxu1 %vm513_vm0, %v512_v0  ;;  %v398_v6 = vld [vmem:[#allocation5 + $0x28] sm:$0xff]   ;;  %v399_v7 = vld [vmem:[#allocation5 + $0x30] sm:$0xff]   ;;  %v400_v8 = vld [vmem:[#allocation5 + $0x38] sm:$0xff]  }
  0x39   :  { %346 = vmatpush3.bf16.msra.mxu0 %v393_v1  ;;  %v61_v9 = vld [vmem:[#allocation2] sm:$0x3]  ;;  %v401_v11 = vld [vmem:[#allocation7] sm:$0xff]   ;;  %v402_v12 = vld [vmem:[#allocation7 + $0x8] sm:$0xff]  }
  0x3a   :  { %347 = vmatprep.subr.bf16.mxu0 %v512_v0  ;;  %v62_v10 = vpack.c.bf16 %v61_v9, %v61_v9  ;;  %366 = vmatpush3.bf16.msra.mxu1 %v401_v11  ;;  %v403_v13 = vld [vmem:[#allocation7 + $0x10] sm:$0xff]   ;;  %v404_v14 = vld [vmem:[#allocation7 + $0x18] sm:$0xff]   ;;  %v405_v15 = vld [vmem:[#allocation7 + $0x20] sm:$0xff]  }
  0x3b   :  { %367 = vmatprep.subr.bf16.mxu1 %v512_v0  ;;  %v406_v16 = vld [vmem:[#allocation7 + $0x28] sm:$0xff]   ;;  %v407_v17 = vld [vmem:[#allocation7 + $0x30] sm:$0xff]   ;;  %v408_v18 = vld [vmem:[#allocation7 + $0x38] sm:$0xff]  }
  0x3c   :  { %v309_v19 = vld [vmem:[%s607_s2] ss:$0 sm:$0xff]  ;;  %s514_s2 = smov [#allocation8]  }
  0x3d   :  { %348 = vmatpush3.bf16.msra.mxu0 %v394_v2  ;;  %v318_v32 = vld [vmem:[%s609_s4] ss:$0 sm:$0xff]  ;;  %s299_s7 = sshll.u32 %s514_s2, 4  ;;  %s300_s7 = int_to_ptr.vmem [resolvable:$true] %s299_s7 }
  0x3e   :  { %349 = vmatprep.subr.bf16.mxu0 %v512_v0  ;;  %368 = vmatpush3.bf16.msra.mxu1 %v402_v12  ;;  %s479_s8 = scalar_lea.vmem %s300_s7, 32  ;;  %p484_p11 = scmp.lt.s32.totalorder %s300_s7, %s300_s7 }
  0x3f   :  { %369 = vmatprep.subr.bf16.mxu1 %v512_v0  ;;  %p480_p10 = scmp.ne.s32.totalorder %s300_s7, %s479_s8  ;;  %p485_p12 = scmp.lt.s32.totalorder %s479_s8, %s479_s8 }
  0x41   :  { %350 = vmatpush3.bf16.msra.mxu0 %v395_v3  ;;  %p486_p13 = por %p485_p12, %p484_p11 }
  0x42   :  { %351 = vmatprep.subr.bf16.mxu0 %v512_v0  ;;  %370 = vmatpush3.bf16.msra.mxu1 %v403_v13 }
  0x43   :  { %371 = vmatprep.subr.bf16.mxu1 %v512_v0  ;;  %p487_p0 = pnand %p486_p13, %p480_p10 }
  0x45   :  { %352 = vmatpush3.bf16.msra.mxu0 %v396_v4 }
  0x46   :  { %353 = vmatprep.subr.bf16.mxu0 %v512_v0  ;;  %372 = vmatpush3.bf16.msra.mxu1 %v404_v14 }
  0x47   :  { %373 = vmatprep.subr.bf16.mxu1 %v512_v0 }
  0x49   :  { %354 = vmatpush3.bf16.msra.mxu0 %v397_v5 }
  0x4a   :  { %355 = vmatprep.subr.bf16.mxu0 %v512_v0  ;;  %374 = vmatpush3.bf16.msra.mxu1 %v405_v15 }
  0x4b   :  { %375 = vmatprep.subr.bf16.mxu1 %v512_v0 }
  0x4d   :  { %356 = vmatpush3.bf16.msra.mxu0 %v398_v6 }
  0x4e   :  { %357 = vmatprep.subr.bf16.mxu0 %v512_v0  ;;  %376 = vmatpush3.bf16.msra.mxu1 %v406_v16 }
  0x4f   :  { %377 = vmatprep.subr.bf16.mxu1 %v512_v0 }
  0x51   :  { %358 = vmatpush3.bf16.msra.mxu0 %v399_v7 }
  0x52   :  { %359 = vmatprep.subr.bf16.mxu0 %v512_v0  ;;  %378 = vmatpush3.bf16.msra.mxu1 %v407_v17 }
  0x53   :  { %379 = vmatprep.subr.bf16.mxu1 %v512_v0 }
  0x55   :  { %360 = vmatpush3.bf16.msra.mxu0 %v400_v8 }
  0x56   :  { %380 = vmatpush3.bf16.msra.mxu1 %v408_v18 }
  0x58   :  { %362 = vmatmul.mubr.bf16.vlgmr.msra.gmra.mrb[0].mxu0 %v62_v10 }
 0x12b   :  { %v168_v20 = vpop.f32.mrb[0].mxu0 }
 0x12c   :  { %v169_v21 = vadd.f32 %v309_v19, %v168_v20  ;;  %v363_v22 = vpop.f32.mrb[1].mxu0 }
 0x12d   :  { %v171_v23 = vpop.f32.mrb[2].mxu0 }
 0x12e   :  { %v174_v24 = vsub.f32 0.0, %v169_v21  ;;  %v364_v25 = vpop.f32.mrb[3].mxu0 }
 0x130   :  { %v175_v26 = vmul.f32 1.442695, %v174_v24 }
 0x132   :  { %409 = vpow2.f32 %v175_v26 }
 0x13c   :  { %v410_v27 = vpop.eup %409 }
 0x13d   :  { %v177_v28 = vadd.f32 1.0, %v410_v27 }
 0x13f   :  { %411 = vrcp.f32 %v177_v28 }
 0x149   :  { %v412_v29 = vpop.eup %411 }
 0x14a   :  { %v179_v30 = vmul.f32 %v412_v29, %v169_v21 }
 0x14c   :  { %v180_v31 = vpack.c.bf16 %v179_v30, %v179_v30 }
 0x14e   :  { %382 = vmatmul.mubr.bf16.vlgmr.msra.gmra.mrb[0].mxu1 %v180_v31 }
 0x221   :  { %v286_v33 = vpop.f32.mrb[0].mxu1 }
 0x222   :  { %v287_v34 = vadd.f32 %v318_v32, %v286_v33  ;;  %v383_v35 = vpop.f32.mrb[1].mxu1 }
 0x223   :  { %v289_v36 = vpop.f32.mrb[2].mxu1 }
 0x224   :  { %292 = vst [vmem:[#allocation8] sm:$0x3] %v287_v34  ;;  %v384_v37 = vpop.f32.mrb[3].mxu1 }
 0x225   :  { %490 = shalt.err (!%p487_p0)
}
 0x226   :  { %s491_s4 = scalar_lea.hbm %s610_s5, 32 }
 0x227   :  { %p492_p1 = scmp.ne.s32.totalorder %s610_s5, %s491_s4  ;;  %p495_p2 = scmp.lt.u32.totalorder %s491_s4, %s610_s5 }
 0x229   :  { %p497_p3 = pnand %p495_p2, %p492_p1 }
 0x22b   :  { %500 = shalt.err (!%p497_p3)
}
 0x22c   :  { %302 = dma.vmem_to_hbm [thread:$0]  %s300_s7, 32, %s610_s5, [#allocation4]  }
 0x22d   :  { %505 = dma.done.wait [#allocation4], 32  }
 0x22e   :  { %506 = vsyncadd [#allocation4], 4294967264 }
 0x22f   :  { %306 = vsyncpa [#allocation3], 1 }
 0x230   :  { %307 = vsyncpa [#allocation6], 1 }
 0x231   :  { %308 = vsyncpa [#allocation4], 1 }

</bundles_post_ra>
